<compile_context>
chip_gen: v6e
topology: v6e:2x2x1
jax: 0.10.0
libtpu: 0.0.40
codegen_flags: <defaults>
</compile_context>

<pallas_src>
import functools

import jax
import jax.numpy as jnp
from jax import lax
from jax.experimental import pallas as pl
from jax.experimental.pallas import tpu as pltpu


def _round_up(x, m):
    return (x + m - 1) // m * m


# ---------------------------------------------------------------------------
# Fused Pallas kernel: one matmul, masked softmax, entropy, mode, log-prob
# ---------------------------------------------------------------------------
def _policy_heads_kernel(feat_ref, w_ref, b_ref, mask_ref, out_ref, *,
                         a_dim, a_pad):
    x = feat_ref[...]                                                # (TB, H)

    # Single fused MXU matmul: actor logits on lanes [0, A), critic value on
    # lane A, remaining lanes are zero-weight padding. f32 accumulation.
    logits = (jnp.dot(x, w_ref[...], preferred_element_type=jnp.float32)
              + b_ref[...])                                          # (TB, A_PAD)

    # ---- mask-fused softmax (== softmax(logits) * mask, renormalized) ----
    valid = mask_ref[...] > 0            # bf16 mask; lanes >= A are padded zero
    neg = jnp.float32(-1e30)
    masked_logits = jnp.where(valid, logits, neg)
    m = jnp.max(masked_logits, axis=-1, keepdims=True)               # (TB, 1)
    e = jnp.where(valid, jnp.exp(masked_logits - m), 0.0)            # (TB, A_PAD)
    z = jnp.maximum(jnp.sum(e, axis=-1, keepdims=True),
                    jnp.float32(1e-30))                              # all-zero guard
    inv_z = pl.reciprocal(z, approx=True)                            # EUP seed
    inv_z = inv_z * (2.0 - z * inv_z)                                # 1 Newton step
    probs = e * inv_z                                                # (TB, A_PAD)

    # ---- entropy in log-sum-exp form: one log per row ----
    log_z = jnp.log(z)
    ent = log_z - jnp.sum(e * (masked_logits - m), axis=-1,
                          keepdims=True) * inv_z                     # (TB, 1)

    # ---- deterministic action (mode = first argmax) + its log-prob ----
    lane = lax.broadcasted_iota(jnp.int32, (x.shape[0], a_pad), 1)
    cand = jnp.where(masked_logits >= m, lane.astype(jnp.float32),
                     jnp.float32(1e9))
    action_f = jnp.min(cand, axis=-1, keepdims=True)                 # (TB, 1)
    act_logp = -log_z                                                # (TB, 1)

    # ---- packed, lane-dense output slab ----
    # lanes [0, A): renormalized masked probs (lanes >= A are exactly zero)
    # lane  A     : critic value  (already sits there in `logits`; no extract)
    # lane  A+1   : entropy
    # lane  A+2   : mode action index (as f32)
    # lane  A+3   : log-prob of the mode action
    misc = (jnp.where(lane == a_dim, logits, 0.0)
            + jnp.where(lane == a_dim + 1, ent, 0.0)
            + jnp.where(lane == a_dim + 2, action_f, 0.0)
            + jnp.where(lane == a_dim + 3, act_logp, 0.0))
    out_ref[...] = probs + misc


# ---------------------------------------------------------------------------
# One-time parameter fusion (hoisted out of the per-step path)
# ---------------------------------------------------------------------------
def prepare_policy_params(wc, bc, wa, ba, *, compute_dtype=jnp.float32):
    """Builds the fused (H, a_pad) weight / (1, a_pad) bias once.

    wc, bc: (H, 1), (1, 1) critic Linear (weight stored transposed)
    wa, ba: (H, A), (1, A) actor  Linear (weight stored transposed)
    """
    H, A = wa.shape
    a_pad = _round_up(A + 4, 128)          # A actor lanes + 4 misc lanes, lane-dense
    w = jnp.zeros((H, a_pad), jnp.float32)
    w = w.at[:, :A].set(wa.astype(jnp.float32))
    w = w.at[:, A].set(wc[:, 0].astype(jnp.float32))
    b = jnp.zeros((1, a_pad), jnp.float32)
    b = b.at[:, :A].set(ba.reshape(1, A).astype(jnp.float32))
    b = b.at[:, A].set(bc.reshape(-1)[0].astype(jnp.float32))
    return {"w": w.astype(compute_dtype), "b": b, "H": H, "A": A, "a_pad": a_pad}


# ---------------------------------------------------------------------------
# Wrapper around pallas_call
# ---------------------------------------------------------------------------
def policy_heads(features, params, action_map_mask, *, block_b=1024):
    """Runs the fused Policy-head kernel.

    features:        (B, H) — output of the external net backbone (f32 or bf16)
    params:          dict from prepare_policy_params()
    action_map_mask: (B, A) — flattened observations['action_map'] validity mask
    Returns value (B,1), probs (B,A), entropy (B,1), action (B,1) int32,
            action_log_probs (B,1) (log-prob of the mode action).
    """
    B, H = features.shape
    A, a_pad = params["A"], params["a_pad"]
    assert H == params["H"]
    w, b = params["w"], params["b"]

    # Batch tiling: >=2 grid steps when B allows, so the "parallel" axis feeds
    # both v7x TensorCores; sublane tile of 16 keeps bf16 mask blocks aligned.
    tb = min(block_b, _round_up(max(-(-B // 2), 1), 16))
    b_pad = _round_up(B, tb)

    feat_p = features if b_pad == B else jnp.pad(features,
                                                 ((0, b_pad - B), (0, 0)))
    # The mask is per-step data, so the (cheap, bf16) pad cannot be hoisted.
    mask_p = jnp.pad(action_map_mask.astype(jnp.bfloat16),
                     ((0, b_pad - B), (0, a_pad - A)))

    cost = pl.CostEstimate(
        flops=2 * b_pad * H * a_pad,
        transcendentals=b_pad * (a_pad + 2),
        bytes_accessed=(feat_p.dtype.itemsize * b_pad * H        # features
                        + w.dtype.itemsize * H * a_pad + 4 * a_pad  # weight+bias
                        + 2 * b_pad * a_pad                      # bf16 mask
                        + 4 * b_pad * a_pad),                    # f32 output slab
    )

    kernel = functools.partial(_policy_heads_kernel, a_dim=A, a_pad=a_pad)

    slab = pl.pallas_call(
        kernel,
        out_shape=jax.ShapeDtypeStruct((b_pad, a_pad), jnp.float32),
        grid=(b_pad // tb,),
        in_specs=[
            pl.BlockSpec((tb, H), lambda i: (i, 0)),        # features (native dtype)
            pl.BlockSpec((H, a_pad), lambda i: (0, 0)),     # fused weight (resident)
            pl.BlockSpec((1, a_pad), lambda i: (0, 0)),     # fused bias
            pl.BlockSpec((tb, a_pad), lambda i: (i, 0)),    # bf16 action mask
        ],
        out_specs=pl.BlockSpec((tb, a_pad), lambda i: (i, 0)),
        compiler_params=pltpu.CompilerParams(
            dimension_semantics=("parallel",),
            vmem_limit_bytes=32 * 1024 * 1024),
        cost_estimate=cost,
    )(feat_p, w, b, mask_p)

    probs = slab[:B, :A]
    value = slab[:B, A:A + 1]
    entropy = slab[:B, A + 1:A + 2]
    action = slab[:B, A + 2:A + 3].astype(jnp.int32)
    action_log_probs = slab[:B, A + 3:A + 4]
    return value, probs, entropy, action, action_log_probs


# ---------------------------------------------------------------------------
# Parameter init (deterministic, mimics nn.init.orthogonal_ / constant_)
# ---------------------------------------------------------------------------
def orthogonal_init(key, shape, gain=1.0):
    """PyTorch-style orthogonal init for a (out_features, in_features) weight."""
    rows, cols = shape
    a = jax.random.normal(key, (max(rows, cols), min(rows, cols)), jnp.float32)
    q, r = jnp.linalg.qr(a)
    q = q * jnp.sign(jnp.diag(r))
    if rows < cols:
        q = q.T
    return gain * q[:rows, :cols]


# ---------------------------------------------------------------------------
# Glue reproducing Policy.act(deterministic=True) on top of net features
# ---------------------------------------------------------------------------
def policy_act_deterministic(features, params, action_map):
    B = features.shape[0]
    mask = action_map.reshape(B, -1)
    value, probs, entropy, action, action_log_probs = policy_heads(
        features, params, mask)
    distribution_entropy = jnp.mean(entropy)      # distribution.entropy().mean()
    return value, action, action_log_probs, distribution_entropy, probs


if __name__ == "__main__":
    # Small shapes consistent with the module:
    #   net.output_size = 32 (hidden features), dim_actions = 16 (4x4 action map)
    B, H, A = 2, 32, 16

    key = jax.random.PRNGKey(0)
    k_feat, k_wc, k_wa, k_map = jax.random.split(key, 4)

    # Pretend `features` is the output of the (external) net backbone.
    features = jax.random.normal(k_feat, (B, H), jnp.float32)

    # CriticHead: Linear(H, 1), orthogonal weight, zero bias. Stored transposed (H, 1).
    wc = orthogonal_init(k_wc, (1, H), gain=1.0).T.astype(jnp.float32)
    bc = jnp.zeros((1, 1), jnp.float32)

    # CategoricalNetWithMask: Linear(H, A), orthogonal(gain=0.01), zero bias. (H, A)
    wa = orthogonal_init(k_wa, (A, H), gain=0.01).T.astype(jnp.float32)
    ba = jnp.zeros((1, A), jnp.float32)

    # Fused params built ONCE (hoisted out of the per-call path).
    params = prepare_policy_params(wc, bc, wa, ba)

    # observations['action_map']: binary validity mask over actions (4x4 flattened).
    action_map = (jax.random.uniform(k_map, (B, 4, 4)) > 0.3).astype(jnp.float32)
    action_map = action_map.at[:, 0, 0].set(1.0)   # at least one valid action / row

    value, action, action_log_probs, dist_entropy, probs = jax.block_until_ready(
        policy_act_deterministic(features, params, action_map))

    # Pure-JAX reference of the same math (softmax -> mask -> renormalize).
    mask2 = action_map.reshape(B, -1)
    logits_ref = features @ wa + ba
    p_ref = jax.nn.softmax(logits_ref, axis=-1) * mask2
    probs_ref = p_ref / jnp.sum(p_ref, axis=-1, keepdims=True)
    value_ref = features @ wc + bc
    safe_p = jnp.where(probs_ref > 0, probs_ref, 1.0)
    ent_rows_ref = -jnp.sum(jnp.where(probs_ref > 0,
                                      probs_ref * jnp.log(safe_p), 0.0), axis=-1)
    action_ref = jnp.argmax(probs_ref, axis=-1, keepdims=True).astype(jnp.int32)
    logp_ref = jnp.take_along_axis(jnp.log(safe_p), action_ref, axis=-1)

    assert value.shape == (B, 1) and action.shape == (B, 1)
    assert action_log_probs.shape == (B, 1) and probs.shape == (B, A)
    assert jnp.allclose(value, value_ref, atol=1e-4), "value mismatch"
    assert jnp.allclose(probs, probs_ref, atol=1e-4), "probs mismatch"
    assert jnp.array_equal(action, action_ref), "action mismatch"
    assert jnp.allclose(action_log_probs, logp_ref, atol=1e-4), "log-prob mismatch"
    assert jnp.allclose(dist_entropy, jnp.mean(ent_rows_ref), atol=1e-4), \
        "entropy mismatch"

    print("KERNEL_OK")
</pallas_src>

<mosaic_0001>
module attributes {stable_mosaic.version = 11 : i64} {
  func.func @_policy_heads_kernel(%arg0: i32, %arg1: memref<16x32xf32, #tpu.memory_space<vmem>>, %arg2: memref<32x128xf32, #tpu.memory_space<vmem>>, %arg3: memref<1x128xf32, #tpu.memory_space<vmem>>, %arg4: memref<16x128xbf16, #tpu.memory_space<vmem>>, %arg5: memref<16x128xf32, #tpu.memory_space<vmem>>) attributes {dimension_semantics = [#tpu.dimension_semantics<parallel>], iteration_bounds = array<i64: 1>, scalar_prefetch = 0 : i64, scratch_operands = 0 : i64, tpu.core_type = #tpu.core_type<tc>, window_params = [{transform_indices = @transform_0, window_bounds = array<i64: 16, 32>}, {pipeline_mode = #tpu.pipeline_mode<synchronous>, transform_indices = @transform_1, window_bounds = array<i64: 32, 128>}, {pipeline_mode = #tpu.pipeline_mode<synchronous>, transform_indices = @transform_2, window_bounds = array<i64: 1, 128>}, {transform_indices = @transform_3, window_bounds = array<i64: 16, 128>}, {transform_indices = @transform_4, window_bounds = array<i64: 16, 128>}]} {
    %c0 = arith.constant 0 : index
    %c0_0 = arith.constant 0 : index
    %0 = vector.load %arg1[%c0, %c0_0] : memref<16x32xf32, #tpu.memory_space<vmem>>, vector<16x32xf32>
    %c0_1 = arith.constant 0 : index
    %c0_2 = arith.constant 0 : index
    %1 = vector.load %arg2[%c0_1, %c0_2] : memref<32x128xf32, #tpu.memory_space<vmem>>, vector<32x128xf32>
    %cst = arith.constant dense<0.000000e+00> : vector<16x128xf32>
    %2 = tpu.matmul %0, %1, %cst {dimension_numbers = #tpu.dot_dimension_numbers<[1], [0], [0], [1], [0, 0, 1, 1], [], []>} : vector<16x32xf32>, vector<32x128xf32>, vector<16x128xf32> -> vector<16x128xf32>
    %c0_3 = arith.constant 0 : index
    %c0_4 = arith.constant 0 : index
    %3 = vector.load %arg3[%c0_3, %c0_4] : memref<1x128xf32, #tpu.memory_space<vmem>>, vector<1x128xf32>
    %4 = vector.broadcast %3 : vector<1x128xf32> to vector<16x128xf32>
    %5 = arith.addf %2, %4 : vector<16x128xf32>
    %c0_5 = arith.constant 0 : index
    %c0_6 = arith.constant 0 : index
    %6 = vector.load %arg4[%c0_5, %c0_6] : memref<16x128xbf16, #tpu.memory_space<vmem>>, vector<16x128xbf16>
    %cst_7 = arith.constant 0.000000e+00 : bf16
    %7 = vector.broadcast %cst_7 : bf16 to vector<16x128xbf16>
    %8 = arith.cmpf ogt, %6, %7 : vector<16x128xbf16>
    %cst_8 = arith.constant -1.000000e+30 : f32
    %9 = vector.broadcast %cst_8 : f32 to vector<16x128xf32>
    %10 = arith.select %8, %5, %9 : vector<16x128xi1>, vector<16x128xf32>
    %cst_9 = arith.constant dense<0xFF800000> : vector<16xf32>
    %11 = vector.multi_reduction <maximumf>, %10, %cst_9 [1] : vector<16x128xf32> to vector<16xf32>
    %12 = vector.shape_cast %11 : vector<16xf32> to vector<16x1xf32>
    %13 = vector.broadcast %12 : vector<16x1xf32> to vector<16x128xf32>
    %14 = arith.subf %10, %13 : vector<16x128xf32>
    %15 = math.exp %14 : vector<16x128xf32>
    %cst_10 = arith.constant 0.000000e+00 : f32
    %16 = vector.broadcast %cst_10 : f32 to vector<16x128xf32>
    %17 = arith.select %8, %15, %16 : vector<16x128xi1>, vector<16x128xf32>
    %cst_11 = arith.constant dense<0.000000e+00> : vector<16xf32>
    %18 = vector.multi_reduction <add>, %17, %cst_11 [1] : vector<16x128xf32> to vector<16xf32>
    %19 = vector.shape_cast %18 : vector<16xf32> to vector<16x1xf32>
    %cst_12 = arith.constant 1.000000e-30 : f32
    %20 = vector.broadcast %cst_12 : f32 to vector<16x1xf32>
    %21 = arith.maximumf %19, %20 : vector<16x1xf32>
    %22 = tpu.reciprocal %21 {approx = true} : vector<16x1xf32> -> vector<16x1xf32>
    %23 = arith.mulf %21, %22 : vector<16x1xf32>
    %cst_13 = arith.constant 2.000000e+00 : f32
    %24 = vector.broadcast %cst_13 : f32 to vector<16x1xf32>
    %25 = arith.subf %24, %23 : vector<16x1xf32>
    %26 = arith.mulf %22, %25 : vector<16x1xf32>
    %27 = vector.broadcast %26 : vector<16x1xf32> to vector<16x128xf32>
    %28 = arith.mulf %17, %27 : vector<16x128xf32>
    %29 = math.log %21 : vector<16x1xf32>
    %30 = vector.broadcast %12 : vector<16x1xf32> to vector<16x128xf32>
    %31 = arith.subf %10, %30 : vector<16x128xf32>
    %32 = arith.mulf %17, %31 : vector<16x128xf32>
    %cst_14 = arith.constant dense<0.000000e+00> : vector<16xf32>
    %33 = vector.multi_reduction <add>, %32, %cst_14 [1] : vector<16x128xf32> to vector<16xf32>
    %34 = vector.shape_cast %33 : vector<16xf32> to vector<16x1xf32>
    %35 = arith.mulf %34, %26 : vector<16x1xf32>
    %36 = arith.subf %29, %35 : vector<16x1xf32>
    %37 = tpu.iota {dimensions = array<i32: 1>} : vector<16x128xi32>
    %38 = vector.broadcast %12 : vector<16x1xf32> to vector<16x128xf32>
    %39 = arith.cmpf oge, %10, %38 : vector<16x128xf32>
    %40 = arith.sitofp %37 : vector<16x128xi32> to vector<16x128xf32>
    %cst_15 = arith.constant 1.000000e+09 : f32
    %41 = vector.broadcast %cst_15 : f32 to vector<16x128xf32>
    %42 = arith.select %39, %40, %41 : vector<16x128xi1>, vector<16x128xf32>
    %cst_16 = arith.constant dense<0x7F800000> : vector<16xf32>
    %43 = vector.multi_reduction <minimumf>, %42, %cst_16 [1] : vector<16x128xf32> to vector<16xf32>
    %44 = vector.shape_cast %43 : vector<16xf32> to vector<16x1xf32>
    %cst_17 = arith.constant 0.000000e+00 : f32
    %45 = vector.broadcast %cst_17 : f32 to vector<16x1xf32>
    %46 = arith.subf %45, %29 : vector<16x1xf32>
    %c16_i32 = arith.constant 16 : i32
    %47 = vector.broadcast %c16_i32 : i32 to vector<16x128xi32>
    %48 = arith.cmpi eq, %37, %47 : vector<16x128xi32>
    %cst_18 = arith.constant 0.000000e+00 : f32
    %49 = vector.broadcast %cst_18 : f32 to vector<16x128xf32>
    %50 = arith.select %48, %5, %49 : vector<16x128xi1>, vector<16x128xf32>
    %c17_i32 = arith.constant 17 : i32
    %51 = vector.broadcast %c17_i32 : i32 to vector<16x128xi32>
    %52 = arith.cmpi eq, %37, %51 : vector<16x128xi32>
    %cst_19 = arith.constant 0.000000e+00 : f32
    %53 = vector.shape_cast %36 : vector<16x1xf32> to vector<16x1xf32>
    %54 = vector.broadcast %53 : vector<16x1xf32> to vector<16x128xf32>
    %55 = vector.broadcast %cst_19 : f32 to vector<16x128xf32>
    %56 = arith.select %52, %54, %55 : vector<16x128xi1>, vector<16x128xf32>
    %57 = arith.addf %50, %56 : vector<16x128xf32>
    %c18_i32 = arith.constant 18 : i32
    %58 = vector.broadcast %c18_i32 : i32 to vector<16x128xi32>
    %59 = arith.cmpi eq, %37, %58 : vector<16x128xi32>
    %cst_20 = arith.constant 0.000000e+00 : f32
    %60 = vector.shape_cast %44 : vector<16x1xf32> to vector<16x1xf32>
    %61 = vector.broadcast %60 : vector<16x1xf32> to vector<16x128xf32>
    %62 = vector.broadcast %cst_20 : f32 to vector<16x128xf32>
    %63 = arith.select %59, %61, %62 : vector<16x128xi1>, vector<16x128xf32>
    %64 = arith.addf %57, %63 : vector<16x128xf32>
    %c19_i32 = arith.constant 19 : i32
    %65 = vector.broadcast %c19_i32 : i32 to vector<16x128xi32>
    %66 = arith.cmpi eq, %37, %65 : vector<16x128xi32>
    %cst_21 = arith.constant 0.000000e+00 : f32
    %67 = vector.shape_cast %46 : vector<16x1xf32> to vector<16x1xf32>
    %68 = vector.broadcast %67 : vector<16x1xf32> to vector<16x128xf32>
    %69 = vector.broadcast %cst_21 : f32 to vector<16x128xf32>
    %70 = arith.select %66, %68, %69 : vector<16x128xi1>, vector<16x128xf32>
    %71 = arith.addf %64, %70 : vector<16x128xf32>
    %72 = arith.addf %28, %71 : vector<16x128xf32>
    %c0_22 = arith.constant 0 : index
    %c0_23 = arith.constant 0 : index
    %73 = vector.load %arg5[%c0_22, %c0_23] : memref<16x128xf32, #tpu.memory_space<vmem>>, vector<16x128xf32>
    tpu.vector_store %arg5[%c0_22, %c0_23], %72 {strides = array<i32>} : memref<16x128xf32, #tpu.memory_space<vmem>>, vector<16x128xf32>,
    return
  }
  func.func @transform_0(%arg0: i32) -> (i32, i32) {
    %c0_i32 = arith.constant 0 : i32
    %c0_i32_0 = arith.constant 0 : i32
    return %arg0, %c0_i32 : i32, i32
  }
  func.func @transform_1(%arg0: i32) -> (i32, i32) {
    %c0_i32 = arith.constant 0 : i32
    %c0_i32_0 = arith.constant 0 : i32
    %c0_i32_1 = arith.constant 0 : i32
    return %c0_i32, %c0_i32_0 : i32, i32
  }
  func.func @transform_2(%arg0: i32) -> (i32, i32) {
    %c0_i32 = arith.constant 0 : i32
    %c0_i32_0 = arith.constant 0 : i32
    %c0_i32_1 = arith.constant 0 : i32
    return %c0_i32, %c0_i32_0 : i32, i32
  }
  func.func @transform_3(%arg0: i32) -> (i32, i32) {
    %c0_i32 = arith.constant 0 : i32
    %c0_i32_0 = arith.constant 0 : i32
    return %arg0, %c0_i32 : i32, i32
  }
  func.func @transform_4(%arg0: i32) -> (i32, i32) {
    %c0_i32 = arith.constant 0 : i32
    %c0_i32_0 = arith.constant 0 : i32
    return %arg0, %c0_i32 : i32, i32
  }
}

</mosaic_0001>

<bundles_post_ra>
// kernel: tpu_custom_call.1
= control target key start
LH: loop header
LB: loop body
LE: loop exit
PB: predicated region body
PF: predicated region fallthrough
CT: control target
= control target key end

     0   :  { %9 = vsyncpa [#allocation3], 0  ;;  %s490_s0 = inlined_call_operand.hbm [shape: f32[16,32], index: 0, kind: input, shape index: {}]   ;;  %s491_s1 = inlined_call_operand.hbm [shape: f32[32,128], index: 1, kind: input, shape index: {}]   ;;  %s492_s2 = inlined_call_operand.vmem [shape: f32[1,128], index: 2, kind: input, shape index: {}]   ;;  %s493_s3 = inlined_call_operand.hbm [shape: bf16[16,128], index: 3, kind: input, shape index: {}]   ;;  %s494_s4 = inlined_call_operand.hbm [shape: f32[16,128], index: 4, kind: output, shape index: {}]  }
   0x1   :  { %10 = vsyncpa [#allocation6], 0 }
   0x2   :  { %11 = vsyncpa [#allocation4], 0  ;;  %s391_s15 = smov [#allocation5]   ;;  %s392_s17 = smov [#allocation2]  }
   0x3   :  { %s29_s16 = sshll.u32 %s391_s15, 4  ;;  %s17_s18 = sshll.u32 %s392_s17, 4  ;;  %s30_s16 = int_to_ptr.vmem [resolvable:$true] %s29_s16  ;;  %s18_s18 = int_to_ptr.vmem [resolvable:$true] %s17_s18 }
   0x4   :  { %s313_s19 = scalar_lea.vmem %s30_s16, 512  ;;  %p318_p1 = scmp.lt.s32.totalorder %s30_s16, %s30_s16 }
   0x5   :  { %p314_p0 = scmp.ne.s32.totalorder %s30_s16, %s313_s19  ;;  %p319_p2 = scmp.lt.s32.totalorder %s313_s19, %s313_s19 }
   0x7   :  { %p320_p3 = por %p319_p2, %p318_p1 }
   0x9   :  { %p321_p4 = pnand %p320_p3, %p314_p0 }
   0xb   :  { %324 = shalt.err (!%p321_p4)
}
   0xc   :  { %s393_s20 = smov 128   ;;  %s394_s21 = smov 8  }
   0xd   :  { %35 = dma.hbm_to_vmem [thread:$0]  %s491_s1, 512, %s30_s16, [#allocation6], %s393_s20, %s393_s20, %s394_s21  }
   0xe   :  { %s333_s24 = scalar_lea.vmem %s18_s18, 256  ;;  %p338_p6 = scmp.lt.s32.totalorder %s18_s18, %s18_s18 }
   0xf   :  { %p334_p5 = scmp.ne.s32.totalorder %s18_s18, %s333_s24  ;;  %p339_p7 = scmp.lt.s32.totalorder %s333_s24, %s333_s24 }
  0x11   :  { %p340_p8 = por %p339_p7, %p338_p6 }
  0x13   :  { %p341_p9 = pnand %p340_p8, %p334_p5 }
  0x15   :  { %344 = shalt.err (!%p341_p9)
}
  0x16   :  { %23 = dma.hbm_to_vmem [thread:$0]  %s490_s0, 256, %s18_s18, [#allocation3], %s393_s20, %s393_s20, %s394_s21  }
  0x17   :  { %s395_s27 = smov [#allocation7]  }
  0x18   :  { %s43_s28 = sshll.u32 %s395_s27, 4  ;;  %s44_s28 = int_to_ptr.vmem [resolvable:$true] %s43_s28 }
  0x19   :  { %s353_s29 = scalar_lea.vmem %s44_s28, 128  ;;  %p358_p11 = scmp.lt.s32.totalorder %s44_s28, %s44_s28 }
  0x1a   :  { %p354_p10 = scmp.ne.s32.totalorder %s44_s28, %s353_s29  ;;  %p359_p12 = scmp.lt.s32.totalorder %s353_s29, %s353_s29 }
  0x1c   :  { %p360_p13 = por %p359_p12, %p358_p11 }
  0x1e   :  { %p361_p0 = pnand %p360_p13, %p354_p10 }
  0x20   :  { %364 = shalt.err (!%p361_p0)
}
  0x21   :  { %s396_s1 = smov 64   ;;  %s397_s30 = smov 4  }
  0x22   :  { %49 = dma.hbm_to_vmem [thread:$0]  %s493_s3, 128, %s44_s28, [#allocation6], %s396_s1, %s396_s1, %s397_s30  }
  0x23   :  { %385 = dma.done.wait [#allocation3], 256  }
  0x24   :  { %386 = vsyncadd [#allocation3], 4294967040 }
  0x25   :  { %387 = dma.done.wait [#allocation6], 640  }
  0x26   :  { %388 = vsyncadd [#allocation6], 4294966656  ;;  %vm75_vm0 = vcmask 261120   ;;  %v67_v0 = vld [vmem:[#allocation5 + $0x18] sm:$0xff]  ;;  %v66_v1 = vld [vmem:[#allocation5 + $0x10] sm:$0xff]  ;;  %v398_v8 = vmov 0   ;;  %v211_v28 = vlaneseq }
  0x27   :  { %273 = vmatprep.subr.mxu0 %v67_v0  ;;  %v62_v2 = vld [vmem:[#allocation2] sm:$0xff]  ;;  %v65_v3 = vld [vmem:[#allocation5 + $0x8] sm:$0xff]  ;;  %v64_v4 = vld [vmem:[#allocation5] sm:$0xff] }
  0x28   :  { %274 = vmatpush3.msra.mxu0 %v67_v0  ;;  %281 = vmatprep.mubr.msk.f32.mxu0 %vm75_vm0, %v62_v2  ;;  %v63_v5 = vld [vmem:[#allocation2 + $0x8] sm:$0xff]  ;;  %v157_v6 = vld [vmem:[#allocation7] sm:$0xf]  ;;  %v158_v7 = vld [vmem:[#allocation7 + $0x4] sm:$0xf]  ;;  %v460_v30 = vand.u32 127, %v211_v28 }
  0x29   :  { %275 = vmatprep.subr.mxu0 %v66_v1  ;;  %vm159_vm1 = vcmp.gt.bf16.partialorder %v157_v6, 0  ;;  %vm160_vm2 = vcmp.gt.bf16.partialorder %v158_v7, 0  ;;  %v264_v13 = vld [vmem:[%s492_s2] ss:$0 sm:$0xff]  ;;  %s399_s2 = smov [#allocation8]  }
  0x2a   :  { %276 = vmatpush3.msra.mxu0 %v66_v1  ;;  %v161_v9 = vsel %vm159_vm1, 65537, %v398_v8  ;;  %v162_v11 = vsel %vm160_vm2, 65537, %v398_v8  ;;  %v215_v33 = vcvt.s32.f32 %v460_v30  ;;  %vm227_vm7 = vcmp.eq.s32.totalorder %v460_v30, 17  ;;  %s251_s7 = sshll.u32 %s399_s2, 4  ;;  %s252_s7 = int_to_ptr.vmem [resolvable:$true] %s251_s7 }
  0x2b   :  { %277 = vmatprep.subr.mxu0 %v65_v3  ;;  %v163_v10 = vunpack.c.l.b16 %v161_v9  ;;  %v164_v16 = vunpack.c.l.b16 %v162_v11  ;;  %vm224_vm8 = vcmp.eq.s32.totalorder %v460_v30, 16  ;;  %vm232_vm9 = vcmp.eq.s32.totalorder %v460_v30, 18  ;;  %s365_s8 = scalar_lea.vmem %s252_s7, 256  ;;  %p370_p2 = scmp.lt.s32.totalorder %s252_s7, %s252_s7 }
  0x2c   :  { %278 = vmatpush3.msra.mxu0 %v65_v3  ;;  %vm237_vm10 = vcmp.eq.s32.totalorder %v460_v30, 19  ;;  %p366_p1 = scmp.ne.s32.totalorder %s252_s7, %s365_s8  ;;  %p371_p3 = scmp.lt.s32.totalorder %s365_s8, %s365_s8 }
  0x2d   :  { %279 = vmatprep.subr.mxu0 %v64_v4  ;;  %vm445_vm3 = vcmp.ne.s32.totalorder %v163_v10, 0  ;;  %vm453_vm4 = vcmp.ne.s32.totalorder %v164_v16, 0 }
  0x2e   :  { %280 = vmatpush3.msra.mxu0 %v64_v4  ;;  %p372_p4 = por %p371_p3, %p370_p2 }
  0x2f   :  { %282 = vmatmul.mubr.msk.f32.vlgmr.msra.gmra.mxu0 %vm75_vm0, %v63_v5 }
  0x30   :  { %p373_p5 = pnand %p372_p4, %p366_p1 }
  0xef   :  { %v283_v12 = vpop.f32.mrf.mxu0 }
  0xf0   :  { %v449_v18 = vadd.f32 %v283_v12, %v264_v13 }
  0xf1   :  { %v148_v14 = vpop.f32.mrf.mxu0 }
  0xf2   :  { %v149_v17 = vadd.f32 %v264_v13, %v148_v14  ;;  %v168_v21 = vsel %vm453_vm4, %v449_v18, -1e+30  ;;  %v226_v5 = vsel %vm224_vm8, %v449_v18, 0.0 }
  0xf4   :  { %v167_v19 = vsel %vm445_vm3, %v149_v17, -1e+30  ;;  %v225_v58 = vsel %vm224_vm8, %v149_v17, 0.0 }
  0xf5   :  { %169 = vmax.xlane.f32.xlu0 %v167_v19 }
  0xf9   :  { %171 = vmax.xlane.f32.xlu0 %v168_v21 }
 0x17e   :  { %v170_v22 = vpop.xlane.xlu0 %169 }
 0x17f   :  { %v173_v23 = vsub.f32 %v167_v19, %v170_v22  ;;  %vm213_vm5 = vcmp.ge.f32.partialorder %v167_v19, %v170_v22 }
 0x180   :  { %v216_v36 = vsel %vm213_vm5, %v215_v33, 1e+09 }
 0x181   :  { %v175_v24 = vmul.f32 1.442695, %v173_v23 }
 0x182   :  { %v172_v25 = vpop.xlane.xlu0 %171 }
 0x183   :  { %293 = vpow2.f32 %v175_v24  ;;  %v174_v26 = vsub.f32 %v168_v21, %v172_v25  ;;  %vm214_vm6 = vcmp.ge.f32.partialorder %v168_v21, %v172_v25 }
 0x184   :  { %v217_v38 = vsel %vm214_vm6, %v215_v33, 1e+09 }
 0x185   :  { %v177_v27 = vmul.f32 1.442695, %v174_v26 }
 0x187   :  { %295 = vpow2.f32 %v177_v27 }
 0x190   :  { %v294_v29 = vpop.eup %293 }
 0x191   :  { %v179_v31 = vsel %vm445_vm3, %v294_v29, 0.0 }
 0x192   :  { %181 = vadd.xlane.f32.xlu1 %v179_v31  ;;  %v201_v32 = vmul.f32 %v179_v31, %v173_v23 }
 0x194   :  { %v296_v34 = vpop.eup %295  ;;  %203 = vadd.xlane.f32.xlu0 %v201_v32 }
 0x195   :  { %v180_v35 = vsel %vm453_vm4, %v296_v34, 0.0 }
 0x196   :  { %183 = vadd.xlane.f32.xlu1 %v180_v35  ;;  %v202_v37 = vmul.f32 %v180_v35, %v174_v26 }
 0x198   :  { %218 = vmin.xlane.f32.xlu0 %v216_v36 }
 0x19a   :  { %205 = vadd.xlane.f32.xlu1 %v202_v37 }
 0x19e   :  { %220 = vmin.xlane.f32.xlu1 %v217_v38 }
 0x21b   :  { %v182_v39 = vpop.xlane.xlu1 %181 }
 0x21c   :  { %v185_v40 = vmax.f32 %v182_v39, 1e-30 }
 0x21d   :  { %v204_v48 = vpop.xlane.xlu0 %203 }
 0x21e   :  { %297 = vrcp.f32 %v185_v40 }
 0x21f   :  { %v184_v41 = vpop.xlane.xlu1 %183  ;;  %299 = vlog2.f32 %v185_v40 }
 0x220   :  { %v186_v42 = vmax.f32 %v184_v41, 1e-30 }
 0x221   :  { %v219_v59 = vpop.xlane.xlu0 %218 }
 0x222   :  { %301 = vrcp.f32 %v186_v42  ;;  %v233_v1 = vsel %vm232_vm9, %v219_v59, 0.0 }
 0x223   :  { %303 = vlog2.f32 %v186_v42  ;;  %v206_v55 = vpop.xlane.xlu1 %205 }
 0x227   :  { %v221_v4 = vpop.xlane.xlu1 %220 }
 0x228   :  { %v234_v12 = vsel %vm232_vm9, %v221_v4, 0.0 }
 0x22b   :  { %v298_v43 = vpop.eup %297 }
 0x22c   :  { %v189_v44 = vmul.f32 %v298_v43, %v185_v40  ;;  %v300_v45 = vpop.eup %299 }
 0x22d   :  { %v198_v51 = vmul.f32 0.6931472, %v300_v45 }
 0x22e   :  { %v191_v46 = vsub.f32 2.0, %v189_v44 }
 0x22f   :  { %v302_v47 = vpop.eup %301  ;;  %v222_v60 = vsub.f32 0.0, %v198_v51 }
 0x230   :  { %v193_v49 = vmul.f32 %v298_v43, %v191_v46  ;;  %v190_v50 = vmul.f32 %v302_v47, %v186_v42  ;;  %v304_v54 = vpop.eup %303 }
 0x231   :  { %v200_v62 = vmul.f32 0.6931472, %v304_v54  ;;  %v238_v6 = vsel %vm237_vm10, %v222_v60, 0.0 }
 0x232   :  { %v207_v52 = vmul.f32 %v204_v48, %v193_v49  ;;  %v192_v53 = vsub.f32 2.0, %v190_v50  ;;  %v195_v9 = vmul.f32 %v193_v49, %v179_v31 }
 0x233   :  { %v223_v7 = vsub.f32 0.0, %v200_v62 }
 0x234   :  { %v209_v56 = vsub.f32 %v198_v51, %v207_v52  ;;  %v194_v57 = vmul.f32 %v302_v47, %v192_v53 }
 0x235   :  { %v239_v15 = vsel %vm237_vm10, %v223_v7, 0.0 }
 0x236   :  { %v228_v61 = vsel %vm227_vm7, %v209_v56, 0.0  ;;  %v208_v63 = vmul.f32 %v206_v55, %v194_v57  ;;  %v196_v16 = vmul.f32 %v194_v57, %v180_v35 }
 0x237   :  { %v230_v0 = vadd.f32 %v228_v61, %v225_v58 }
 0x238   :  { %v210_v2 = vsub.f32 %v200_v62, %v208_v63 }
 0x239   :  { %v235_v3 = vadd.f32 %v233_v1, %v230_v0 }
 0x23a   :  { %v229_v8 = vsel %vm227_vm7, %v210_v2, 0.0 }
 0x23b   :  { %v240_v10 = vadd.f32 %v238_v6, %v235_v3  ;;  %v231_v11 = vadd.f32 %v229_v8, %v226_v5 }
 0x23d   :  { %v236_v13 = vadd.f32 %v234_v12, %v231_v11  ;;  %v242_v14 = vadd.f32 %v240_v10, %v195_v9 }
 0x23f   :  { %v241_v17 = vadd.f32 %v239_v15, %v236_v13  ;;  %244 = vst [vmem:[#allocation8] sm:$0xff] %v242_v14 }
 0x241   :  { %v243_v18 = vadd.f32 %v241_v17, %v196_v16 }
 0x243   :  { %245 = vst [vmem:[#allocation8 + $0x8] sm:$0xff] %v243_v18 }
 0x244   :  { %376 = shalt.err (!%p373_p5)
}
 0x245   :  { %257 = dma.vmem_to_hbm [thread:$0]  %s252_s7, 256, %s494_s4, [#allocation4], %s393_s20, %s393_s20, %s394_s21  }
 0x246   :  { %389 = dma.done.wait [#allocation4], 256  }
 0x247   :  { %390 = vsyncadd [#allocation4], 4294967040 }
 0x248   :  { %261 = vsyncpa [#allocation3], 1 }
 0x249   :  { %262 = vsyncpa [#allocation6], 1 }
 0x24a   :  { %263 = vsyncpa [#allocation4], 1 }

</bundles_post_ra>
